<compile_context>
chip_gen: v7x
topology: tpu7x:2x2x1
jax: 0.10.0
libtpu: 0.0.40
codegen_flags: <defaults>
</compile_context>

<pallas_src>
import jax
import jax.numpy as jnp
from jax.experimental import pallas as pl
from jax.experimental.pallas import tpu as pltpu


def _round_up(x, m):
    return ((x + m - 1) // m) * m


def _chip_vmem_bytes():
    try:
        return int(pltpu.get_tpu_info().vmem_capacity_bytes)
    except Exception:
        return 64 * 1024 * 1024      # conservative: v7x per-TC VMEM


def _steps_kernel(x_ref, w_ref, b_ref, o_ref, h_ref):
    """One grid iteration == one (row-tile m, step s) pair.

    x_ref: (tm, Hp)     input activations for this row tile (read at step 0)
    w_ref: (1, Hp, Hp)  this step's weight, bf16, already [in, out] layout
    b_ref: (S, 1, Hp)   ALL biases, f32, VMEM-resident (constant index_map)
    o_ref: (tm, Hp)     output block (written once, at the last step)
    h_ref: (tm, Hp)     f32 VMEM scratch carrying the running activation
    """
    step = pl.program_id(1)

    # Seed the resident f32 activation from the kernel input at step 0.
    @pl.when(step == 0)
    def _():
        h_ref[...] = x_ref[...].astype(jnp.float32)

    # Native MXU path: cast the activation DOWN to bf16; never up-cast the
    # (Hp, Hp) weight (no huge f32 temporary, half the weight-stream bytes).
    h_bf16 = h_ref[...].astype(jnp.bfloat16)
    y = jnp.dot(h_bf16, w_ref[0], preferred_element_type=jnp.float32)
    y = y + b_ref[step]                         # (1, Hp) f32 bias, broadcasts
    h_ref[...] = jnp.tanh(y)                    # f32 elementwise path (v5e-safe)

    # Single writeback at the final step (output block index constant in s).
    @pl.when(step == pl.num_programs(1) - 1)
    def _():
        o_ref[...] = h_ref[...].astype(o_ref.dtype)


def _pick_tm(M, Hp, S, x_dtype, w_dtype, requested=None, target=512):
    """Largest row tile the VMEM budget allows, 256-aligned when big enough."""
    if requested is not None:
        return int(requested)
    xi = jnp.dtype(x_dtype).itemsize
    wi = jnp.dtype(w_dtype).itemsize
    cap = _chip_vmem_bytes() - (4 << 20)            # compiler headroom
    fixed = 2 * Hp * Hp * wi + 2 * S * 8 * Hp * 4   # dbuf weight + resident bias
    per_row = Hp * (2 * xi + 2 * xi + 4)            # x dbuf + out dbuf + f32 carry
    tm_cap = max(8, (cap - fixed) // max(per_row, 1))
    tm = min(target, _round_up(M, 8), tm_cap)
    # 256-alignment keeps the v6e/v7x 2x256x256 MXU full; small M falls back to 8.
    align = 256 if tm >= 256 else 8
    tm = max(8, (tm // align) * align)
    return int(tm)


def _vmem_budget_bytes(tm, Hp, S, x_dtype, w_dtype):
    """Exact block accounting (double buffers included), clamped to chip VMEM."""
    xi = jnp.dtype(x_dtype).itemsize
    wi = jnp.dtype(w_dtype).itemsize
    need = (2 * tm * Hp * xi            # input blocks, double-buffered
            + 2 * tm * Hp * xi          # output blocks, double-buffered
            + 2 * Hp * Hp * wi          # per-step bf16 weight, double-buffered
            + 2 * S * 8 * Hp * 4        # resident f32 bias (sublane-padded)
            + tm * Hp * 4               # f32 activation scratch
            + (2 << 20))                # compiler scratch headroom
    need = max(int(need), 8 * 1024 * 1024)
    return min(need, _chip_vmem_bytes())


def arbitrary_iterations(x, weights, biases, *, tm=None):
    """Apply the stacked Linear+Tanh steps sequentially via one pallas_call.

    x:       (M, H)
    weights: (S, H_out, H_in)   -- PyTorch nn.Linear layout
    biases:  (S, H_out)
    returns: (M, H) in x.dtype
    """
    M, H = x.shape
    S = weights.shape[0]

    # Pad the hidden dim to a lane-dense multiple of 128.  Zero padding is
    # exact through Linear+Tanh: padded columns stay 0 and contribute nothing.
    Hp = _round_up(H, 128)
    if Hp != H:
        x = jnp.pad(x, ((0, 0), (0, Hp - H)))
        weights = jnp.pad(weights, ((0, 0), (0, Hp - H), (0, Hp - H)))
        biases = jnp.pad(biases, ((0, 0), (0, Hp - H)))

    # One-time layout + dtype transform outside the kernel:
    #   (S, H_in, H_out) bf16 -> the MXU streams half the bytes, no in-kernel .T
    w_t = jnp.swapaxes(weights, 1, 2).astype(jnp.bfloat16)
    b_f32 = biases.astype(jnp.float32).reshape(S, 1, Hp)   # resident bias block

    tm_ = _pick_tm(M, Hp, S, x.dtype, w_t.dtype, requested=tm)
    Mp = _round_up(M, tm_)
    if Mp != M:
        x = jnp.pad(x, ((0, Mp - M), (0, 0)))    # padded rows are discarded

    out = pl.pallas_call(
        _steps_kernel,
        out_shape=jax.ShapeDtypeStruct((Mp, Hp), x.dtype),
        grid_spec=pltpu.PrefetchScalarGridSpec(
            num_scalar_prefetch=0,
            grid=(Mp // tm_, S),                      # (row tiles, steps)
            in_specs=[
                # row tile of activations; constant in s -> fetched once per tile
                pl.BlockSpec((tm_, Hp), lambda m, s: (m, 0)),
                # per-step bf16 weight slice, already [in, out]
                pl.BlockSpec((1, Hp, Hp), lambda m, s: (s, 0, 0)),
                # full bias stack, constant index_map -> VMEM-resident
                pl.BlockSpec((S, 1, Hp), lambda m, s: (0, 0, 0)),
            ],
            # same output block across the step axis -> written once at the end
            out_specs=pl.BlockSpec((tm_, Hp), lambda m, s: (m, 0)),
            scratch_shapes=[pltpu.VMEM((tm_, Hp), jnp.float32)],
        ),
        compiler_params=pltpu.CompilerParams(
            dimension_semantics=("parallel", "arbitrary"),
            vmem_limit_bytes=_vmem_budget_bytes(tm_, Hp, S, x.dtype, w_t.dtype),
        ),
    )(x, w_t, b_f32)

    return out[:M, :H]


def _reference_matched(x, weights, biases):
    """Pure-JAX reference with the SAME dtype path as the kernel
    (bf16 matmul operands, f32 accumulate / bias / tanh)."""
    h = x.astype(jnp.float32)
    for i in range(weights.shape[0]):
        w = weights[i].astype(jnp.bfloat16)
        y = jnp.dot(h.astype(jnp.bfloat16), w.T,
                    preferred_element_type=jnp.float32)
        h = jnp.tanh(y + biases[i].astype(jnp.float32))
    return h.astype(x.dtype)


def _reference_f32(x, weights, biases):
    """Pure-f32 reference of the sequential loop (PyTorch Linear semantics)."""
    h = x.astype(jnp.float32)
    for i in range(weights.shape[0]):
        h = jnp.tanh(h @ weights[i].astype(jnp.float32).T
                     + biases[i].astype(jnp.float32))
    return h.astype(x.dtype)


# TODO(synk): clear_kv_cache() is stateful module bookkeeping with no tensor
# computation; it has no Pallas equivalent and is intentionally omitted.

if __name__ == "__main__":
    key = jax.random.PRNGKey(0)
    batch, seq, hidden, n_steps = 2, 8, 32, 3

    k_x, k_w, k_b = jax.random.split(key, 3)
    x = jax.random.normal(k_x, (batch, seq, hidden), dtype=jnp.float32)
    # Deterministic synthetic parameters (PyTorch nn.Linear layout: [out, in]).
    weights = jax.random.normal(
        k_w, (n_steps, hidden, hidden), dtype=jnp.float32) * 0.1
    biases = jax.random.normal(k_b, (n_steps, hidden), dtype=jnp.float32) * 0.1

    x2d = x.reshape(batch * seq, hidden)    # glue reshape outside the kernel

    # tm=8 exercises the parallel row-tile axis even at this tiny demo size.
    out = arbitrary_iterations(x2d, weights, biases, tm=8)
    out = jax.block_until_ready(out)

    ref_m = _reference_matched(x2d, weights, biases)
    ref_f = _reference_f32(x2d, weights, biases)

    assert out.shape == (batch * seq, hidden)
    assert jnp.allclose(out, ref_m, atol=2e-3, rtol=2e-3), \
        "mismatch vs dtype-matched reference"
    assert jnp.allclose(out, ref_f, atol=5e-2, rtol=5e-2), \
        "mismatch vs f32 reference"

    print("KERNEL_OK")
</pallas_src>

<mosaic_0001>
module attributes {stable_mosaic.version = 11 : i64} {
  func.func @_steps_kernel(%arg0: i32, %arg1: i32, %arg2: memref<8x128xf32, #tpu.memory_space<vmem>>, %arg3: memref<1x128x128xbf16, #tpu.memory_space<vmem>>, %arg4: memref<3x1x128xf32, #tpu.memory_space<vmem>>, %arg5: memref<8x128xf32, #tpu.memory_space<vmem>>, %arg6: memref<8x128xf32, #tpu.memory_space<vmem>>) attributes {dimension_semantics = [#tpu.dimension_semantics<parallel>, #tpu.dimension_semantics<arbitrary>], iteration_bounds = array<i64: 2, 3>, scalar_prefetch = 0 : i64, scratch_operands = 1 : i64, tpu.core_type = #tpu.core_type<tc>, window_params = [{transform_indices = @transform_0, window_bounds = array<i64: 8, 128>}, {transform_indices = @transform_1, window_bounds = array<i64: 1, 128, 128>}, {pipeline_mode = #tpu.pipeline_mode<synchronous>, transform_indices = @transform_2, window_bounds = array<i64: 3, 1, 128>}, {transform_indices = @transform_3, window_bounds = array<i64: 8, 128>}]} {
    %c0_i32 = arith.constant 0 : i32
    %0 = arith.cmpi eq, %arg1, %c0_i32 : i32
    %1 = arith.extui %0 : i1 to i32
    %c0_i32_0 = arith.constant 0 : i32
    %2 = arith.cmpi ne, %1, %c0_i32_0 : i32
    scf.if %2 {
      %c0_10 = arith.constant 0 : index
      %c0_11 = arith.constant 0 : index
      %18 = vector.load %arg2[%c0_10, %c0_11] : memref<8x128xf32, #tpu.memory_space<vmem>>, vector<8x128xf32>
      %c0_12 = arith.constant 0 : index
      %c0_13 = arith.constant 0 : index
      %19 = vector.load %arg6[%c0_12, %c0_13] : memref<8x128xf32, #tpu.memory_space<vmem>>, vector<8x128xf32>
      tpu.vector_store %arg6[%c0_12, %c0_13], %18 {strides = array<i32>} : memref<8x128xf32, #tpu.memory_space<vmem>>, vector<8x128xf32>,
    } else {
    }
    %c0 = arith.constant 0 : index
    %c0_1 = arith.constant 0 : index
    %3 = vector.load %arg6[%c0, %c0_1] : memref<8x128xf32, #tpu.memory_space<vmem>>, vector<8x128xf32>
    %4 = arith.truncf %3 : vector<8x128xf32> to vector<8x128xbf16>
    %c0_2 = arith.constant 0 : index
    %c0_3 = arith.constant 0 : index
    %c0_4 = arith.constant 0 : index
    %5 = vector.load %arg3[%c0_2, %c0_3, %c0_4] : memref<1x128x128xbf16, #tpu.memory_space<vmem>>, vector<1x128x128xbf16>
    %6 = vector.shape_cast %5 : vector<1x128x128xbf16> to vector<128x128xbf16>
    %cst = arith.constant dense<0.000000e+00> : vector<8x128xf32>
    %7 = tpu.matmul %4, %6, %cst {dimension_numbers = #tpu.dot_dimension_numbers<[1], [0], [0], [1], [0, 0, 1, 1], [], []>} : vector<8x128xbf16>, vector<128x128xbf16>, vector<8x128xf32> -> vector<8x128xf32>
    %8 = arith.index_cast %arg1 : i32 to index
    %c0_5 = arith.constant 0 : index
    %c0_6 = arith.constant 0 : index
    %9 = vector.load %arg4[%8, %c0_5, %c0_6] : memref<3x1x128xf32, #tpu.memory_space<vmem>>, vector<1x1x128xf32>
    %10 = vector.shape_cast %9 : vector<1x1x128xf32> to vector<1x128xf32>
    %11 = vector.broadcast %10 : vector<1x128xf32> to vector<8x128xf32>
    %12 = arith.addf %7, %11 : vector<8x128xf32>
    %13 = math.tanh %12 : vector<8x128xf32>
    %c0_7 = arith.constant 0 : index
    %c0_8 = arith.constant 0 : index
    %14 = vector.load %arg6[%c0_7, %c0_8] : memref<8x128xf32, #tpu.memory_space<vmem>>, vector<8x128xf32>
    tpu.vector_store %arg6[%c0_7, %c0_8], %13 {strides = array<i32>} : memref<8x128xf32, #tpu.memory_space<vmem>>, vector<8x128xf32>,
    %c2_i32 = arith.constant 2 : i32
    %15 = arith.cmpi eq, %arg1, %c2_i32 : i32
    %16 = arith.extui %15 : i1 to i32
    %c0_i32_9 = arith.constant 0 : i32
    %17 = arith.cmpi ne, %16, %c0_i32_9 : i32
    scf.if %17 {
      %c0_10 = arith.constant 0 : index
      %c0_11 = arith.constant 0 : index
      %18 = vector.load %arg6[%c0_10, %c0_11] : memref<8x128xf32, #tpu.memory_space<vmem>>, vector<8x128xf32>
      %c0_12 = arith.constant 0 : index
      %c0_13 = arith.constant 0 : index
      %19 = vector.load %arg5[%c0_12, %c0_13] : memref<8x128xf32, #tpu.memory_space<vmem>>, vector<8x128xf32>
      tpu.vector_store %arg5[%c0_12, %c0_13], %18 {strides = array<i32>} : memref<8x128xf32, #tpu.memory_space<vmem>>, vector<8x128xf32>,
    } else {
    }
    return
  }
  func.func @transform_0(%arg0: i32, %arg1: i32) -> (i32, i32) {
    %c0_i32 = arith.constant 0 : i32
    %c0_i32_0 = arith.constant 0 : i32
    return %arg0, %c0_i32 : i32, i32
  }
  func.func @transform_1(%arg0: i32, %arg1: i32) -> (i32, i32, i32) {
    %c0_i32 = arith.constant 0 : i32
    %c0_i32_0 = arith.constant 0 : i32
    %c0_i32_1 = arith.constant 0 : i32
    return %arg1, %c0_i32, %c0_i32_0 : i32, i32, i32
  }
  func.func @transform_2(%arg0: i32, %arg1: i32) -> (i32, i32, i32) {
    %c0_i32 = arith.constant 0 : i32
    %c0_i32_0 = arith.constant 0 : i32
    %c0_i32_1 = arith.constant 0 : i32
    %c0_i32_2 = arith.constant 0 : i32
    return %c0_i32, %c0_i32_0, %c0_i32_1 : i32, i32, i32
  }
  func.func @transform_3(%arg0: i32, %arg1: i32) -> (i32, i32) {
    %c0_i32 = arith.constant 0 : i32
    %c0_i32_0 = arith.constant 0 : i32
    return %arg0, %c0_i32 : i32, i32
  }
}

</mosaic_0001>

<bundles_post_ra>
// kernel: tpu_custom_call.1
= control target key start
LH: loop header
LB: loop body
LE: loop exit
PB: predicated region body
PF: predicated region fallthrough
CT: control target
= control target key end

     0   :  { %s1179_s0 = inlined_call_operand.hbm [shape: f32[16,128], index: 0, kind: input, shape index: {}]   ;;  %s1180_s1 = inlined_call_operand.hbm [shape: bf16[3,128,128], index: 1, kind: input, shape index: {}]   ;;  %s1181_s2 = inlined_call_operand.vmem [shape: f32[3,1,128], index: 2, kind: input, shape index: {}]   ;;  %s1182_s3 = inlined_call_operand.hbm [shape: f32[16,128], index: 3, kind: output, shape index: {}]  }
   0x1   :  { %1190 = sst [smem:[#allocation16_spill]] %s1179_s0 }
   0x2   :  { %8 = vsyncpa [#allocation4], 0 }
   0x3   :  { %10 = vsyncpa [#allocation4 + $0x1], 0 }
   0x4   :  { %11 = vsyncpa [#allocation7], 0 }
   0x5   :  { %13 = vsyncpa [#allocation7 + $0x1], 0 }
   0x6   :  { %14 = vsyncpa [#allocation5], 0 }
   0x7   :  { %16 = vsyncpa [#allocation5 + $0x1], 0  ;;  %s880_s12 = smov 0   ;;  %s882_s13 = smov 0  }
   0x8   :  { %s884_s14 = smov 0   ;;  %s886_s15 = smov 0  }
   0x9   :  { %s888_s16 = smov 0   ;;  %s890_s17 = smov 0  }
   0xa   :  { %s892_s18 = smov 0   ;;  %s894_s19 = smov 0  }
   0xb   :  { %s896_s20 = smov 0   ;;  %s898_s21 = smov 0  }
   0xc   :  { %s900_s22 = smov 0  }
   0xd LB: > { %1191 = sst [smem:[#allocation12_spill]] %s843_s20  ;;  %s486_s23 = sadd.s32 4294967295, %s851_s22   ;;  %s851_s22 = sphi %s900_s22, %s22_s22   ;;  %s847_s21 = sphi %s898_s21, %s1223_s21   ;;  %s843_s20 = sphi %s896_s20, %s1222_s20   ;;  %s839_s19 = sphi %s894_s19, %s1221_s19   ;;  %s835_s18 = sphi %s892_s18, %s1212_s18   ;;  %s831_s17 = sphi %s890_s17, %s1220_s17   ;;  %s827_s16 = sphi %s888_s16, %s1219_s16   ;;  %s823_s15 = sphi %s886_s15, %s1218_s15   ;;  %s819_s14 = sphi %s884_s14, %s1217_s14   ;;  %s815_s13 = sphi %s882_s13, %s1216_s13   ;;  %s811_s12 = sphi %s880_s12, %s1215_s12  }
   0xe   : > { %s487_s24 = sadd.s32 4294967294, %s851_s22   ;;  %s34_s25 = sadd.s32 1, %s847_s21 }
   0xf   : > { %p48_p0 = scmp.ne.s32.totalorder %s831_s17, %s827_s16  ;;  %p49_p1 = scmp.eq.s32.totalorder %s851_s22, 0 }
  0x10   : > { %p54_p2 = scmp.ne.s32.totalorder %s827_s16, %s823_s15  ;;  %p55_p3 = scmp.eq.s32.totalorder %s486_s23, 0 }
  0x11   : > { %p942_p4 = por %p49_p1, %p48_p0  ;;  %p74_p5 = scmp.ne.s32.totalorder %s819_s14, %s815_s13 }
  0x12   : > { %p948_p6 = por %p55_p3, %p54_p2  ;;  %p80_p7 = scmp.ne.s32.totalorder %s815_s13, %s811_s12 }
  0x13   : > { %p953_p8 = por %p74_p5, %p49_p1  ;;  %p125_p9 = scmp.eq.s32.totalorder %s486_s23, 5 }
  0x14   : > { %s1193_s28 = scalar_select %p948_p6, 1, 0 }
  0x15   : > { %p957_p10 = por %p80_p7, %p55_p3  ;;  %p131_p11 = scmp.eq.s32.totalorder %s487_s24, 5 }
  0x16   : > { %p961_p12 = por %p125_p9, %p48_p0  ;;  %p561_p1 = scmp.lt.s32.totalorder %s851_s22, 6 }
  0x17   : > { %s1195_s30 = scalar_select %p957_p10, 1, 0 }
  0x18   : > { %s1196_s4 = scalar_select %p961_p12, 1, 0 }
  0x19   : > { %p965_p13 = por %p131_p11, %p54_p2  ;;  %s154_s6 = sand.u32 1, %s831_s17  }
  0x1a   : > { %s491_s7 = sshll.u32 %s847_s21, 7  ;;  %s490_s8 = sshll.u32 %s154_s6, 3 }
  0x1b   : > { %s1197_s5 = scalar_select %p965_p13, 1, 0 }
  0x1c   : > { %s1199_s0 = sld [smem:[#allocation16_spill]]  ;;  %s158_s12 = scalar_lea.vmem [#allocation3], %s490_s8 }
  0x1d   : > { %1198 = sst [smem:[#allocation13_spill]] %s1197_s5  ;;  %s165_s23 = sshll.u32 %s158_s12, 4  ;;  %s983_s23 = int_to_ptr.vmem [resolvable:$true] %s165_s23 }
  0x1e   : > { %p979_p0 = pnand %p561_p1, %p942_p4  ;;  %p987_p2 = pnand %p561_p1, %p953_p8 }
  0x20   : > { %p667_p7 = pneg %p979_p0 }
  0x22   : > { %s975_s11 = scalar_lea.hbm %s1199_s0, %s491_s7  ;;  %s155_s7 = scalar_lea.sflag [#allocation4], %s154_s6 }
  0x23   : > { %s665_s10 = scalar_lea.hbm %s975_s11, 128  ;;  %s670_s12 = scalar_lea.hbm %s1199_s0, 256 }
  0x24   : > { %p666_p5 = scmp.ne.s32.totalorder %s975_s11, %s665_s10  ;;  %p671_p8 = scmp.lt.u32.totalorder %s975_s11, %s1199_s0 }
  0x25   : > { %p672_p11 = scmp.lt.u32.totalorder %s670_s12, %s665_s10  ;;  %p674_p3 = scmp.lt.u32.totalorder %s665_s10, %s975_s11 }
  0x26   : > { %p668_p4 = pnand %p667_p7, %p666_p5 }
  0x27   : > { %p673_p1 = por %p672_p11, %p671_p8 }
  0x28   : > { %p669_p9 = pneg %p668_p4 }
  0x29   : > { %p675_p13 = por %p674_p3, %p673_p1 }
  0x2b   : > { %p676_p12 = pnand %p675_p13, %p669_p9 }
  0x2d   : > { %679 = shalt.err (!%p676_p12)
}
  0x2e   : > { %s680_s6 = scalar_lea.vmem %s983_s23, 128  ;;  %s853_s27 = smov [#allocation3]  }
  0x2f   : > { %p681_p5 = scmp.ne.s32.totalorder %s983_s23, %s680_s6  ;;  %s685_s8 = sshll.u32 %s853_s27, 4  ;;  %s686_s8 = int_to_ptr.vmem [resolvable:$false] %s685_s8 }
  0x30   : > { %s687_s26 = scalar_lea.vmem %s686_s8, 256  ;;  %p688_p6 = scmp.lt.s32.totalorder %s983_s23, %s686_s8 }
  0x31   : > { %p683_p4 = pnand %p681_p5, %p667_p7  ;;  %p689_p8 = scmp.lt.s32.totalorder %s687_s26, %s680_s6 }
  0x33   : > { %p684_p10 = pneg %p683_p4  ;;  %p690_p11 = por %p689_p8, %p688_p6 }
  0x35   : > { %p691_p3 = pnand %p690_p11, %p684_p10 }
  0x37   : > { %694 = shalt.err (!%p691_p3)
}
  0x38   : > { %553 = dma.hbm_to_vmem [thread:$0]  (!%p979_p0), %s975_s11, 128, %s983_s23, %s155_s7  }
  0x39   : > { %p191_p12 = scmp.lt.s32.totalorder %s851_s22, 7  ;;  %s67_s10 = sadd.s32 1, %s819_s14 }
  0x3a   : > { %p1202_p13 = scmp.ge.s32.totalorder %s851_s22, 1  ;;  %s31_s24 = sadd.s32 1, %s843_s20 }
  0x3b   : > { %s172_s29 = sand.u32 1, %s819_s14   ;;  %p32_p10 = scmp.ge.s32.totalorder %s31_s24, 3 }
  0x3c   : > { %p1021_p6 = pnand %p1202_p13, %p191_p12  ;;  %s492_s6 = sshll.u32 %s172_s29, 6 }
  0x3d   : > { %s514_s27 = sshll.u32 %s843_s20, 10  ;;  %s1225_s24 = smov (%p32_p10, %s31_s24), 0 }
  0x3e   : > { %1204 = sst [smem:[#allocation14_spill]] %s1225_s24  ;;  %s1227_s25 = smov (!%p32_p10, %s34_s25), %s847_s21 }
  0x3f   : > { %s64_s11 = ssub.s32 %s843_s20, %s1225_s24  ;;  %p36_p0 = scmp.ge.s32.totalorder %s1227_s25, 2 }
  0x40   : > { %p65_p7 = scmp.eq.s32.totalorder %s64_s11, 0  ;;  %s1038_s8 = scalar_lea.hbm %s1180_s1, %s514_s27 }
  0x41   : > { %s176_s26 = scalar_lea.vmem [#allocation6], %s492_s6  ;;  %s1229_s25 = smov (%p36_p0, %s1227_s25), 0 }
  0x42   : > { %s183_s0 = sshll.u32 %s176_s26, 4  ;;  %1205 = sst [smem:[#allocation15_spill]] %s1229_s25  ;;  %s1047_s0 = int_to_ptr.vmem [resolvable:$true] %s183_s0 }
  0x43   : > { %s1043_s5 = scalar_select %p65_p7, %s819_s14, %s67_s10  }
  0x44   : > { %s38_s24 = ssub.s32 %s847_s21, %s1229_s25  ;;  %s1206_s11 = sadd.s32 1, %s831_s17 }
  0x45   : > { %p39_p9 = scmp.eq.s32.totalorder %s38_s24, 0  ;;  %s1054_s27 = scalar_lea.sflag [#allocation7], %s172_s29 }
  0x46   : > { %s695_s23 = scalar_lea.hbm %s1038_s8, 1024  ;;  %p697_p5 = pneg %p987_p2 }
  0x47   : > { %s1052_s20 = scalar_select %p39_p9, %s831_s17, %s1206_s11  }
  0x48   : > { %p696_p1 = scmp.ne.s32.totalorder %s1038_s8, %s695_s23  ;;  %s700_s7 = scalar_lea.hbm %s1180_s1, 3072 }
  0x49   : > { %p701_p11 = scmp.lt.u32.totalorder %s1038_s8, %s1180_s1  ;;  %p702_p3 = scmp.lt.u32.totalorder %s700_s7, %s695_s23 }
  0x4a   : > { %p698_p4 = pnand %p697_p5, %p696_p1  ;;  %p704_p13 = scmp.lt.u32.totalorder %s695_s23, %s1038_s8 }
  0x4b   : > { %p703_p12 = por %p702_p3, %p701_p11 }
  0x4c   : > { %p699_p8 = pneg %p698_p4 }
  0x4d   : > { %p705_p10 = por %p704_p13, %p703_p12 }
  0x4f   : > { %p706_p0 = pnand %p705_p10, %p699_p8 }
  0x51   : > { %709 = shalt.err (!%p706_p0)
}
  0x52   : > { %s710_s24 = scalar_lea.vmem %s1047_s0, 1024  ;;  %s854_s29 = smov [#allocation6]  }
  0x53   : > { %p711_p7 = scmp.ne.s32.totalorder %s1047_s0, %s710_s24  ;;  %s715_s11 = sshll.u32 %s854_s29, 4  ;;  %s716_s11 = int_to_ptr.vmem [resolvable:$false] %s715_s11 }
  0x54   : > { %s717_s25 = scalar_lea.vmem %s716_s11, 2048  ;;  %p718_p4 = scmp.lt.s32.totalorder %s1047_s0, %s716_s11 }
  0x55   : > { %p713_p9 = pnand %p711_p7, %p697_p5  ;;  %p719_p11 = scmp.lt.s32.totalorder %s717_s25, %s710_s24 }
  0x57   : > { %p714_p1 = pneg %p713_p9  ;;  %p720_p3 = por %p719_p11, %p718_p4 }
  0x59   : > { %p721_p12 = pnand %p720_p3, %p714_p1 }
  0x5b   : > { %724 = shalt.err (!%p721_p12)
}
  0x5c   : > { %s855_s23 = smov 64   ;;  %s856_s6 = smov 4  }
  0x5d   : > { %556 = dma.hbm_to_vmem [thread:$0]  (!%p987_p2), %s1038_s8, 1024, %s1047_s0, %s1054_s27, %s855_s23, %s855_s23, %s856_s6  }
  0x5e   : > { %195 = sbr.rel (%p1021_p6) target bundleno = 407 (0x197), region = 32  ;;  %s1085_s10 = sand.u32 (!%p1021_p6), 1, %s827_s16  }
  0x5f   : > { %s496_s7 = sshll.u32 (!%p1021_p6), %s1085_s10, 3  ;;  %s198_s26 = scalar_lea.sflag (!%p1021_p6), [#allocation4], %s1085_s10 }
  0x60   : > { %s201_s24 = scalar_lea.vmem (!%p1021_p6), [#allocation3], %s496_s7  ;;  %p1207_p5 = scmp.ne.s32.totalorder (!%p1021_p6), %s1193_s28, 0 }
  0x65   : > { %798 = dma.done.wait (%p1207_p5), %s198_s26, 128  }
  0x66   : > { %800 = vsyncadd (%p1207_p5), %s198_s26, 4294967168  ;;  %s206_s0 = sand.u32 1, %s815_s13   ;;  %p1208_p2 = scmp.ne.s32.totalorder %s1195_s30, 0 }
  0x67   : > { %s497_s9 = sshll.u32 %s206_s0, 6  ;;  %s207_s12 = scalar_lea.sflag [#allocation7], %s206_s0 }
  0x68   : > { %s1094_s8 = scalar_lea.vmem [#allocation6], %s497_s9 }
  0x69   : > { %802 = dma.done.wait (%p1208_p2), %s207_s12, 1024  }
  0x6a   : > { %804 = vsyncadd (%p1208_p2), %s207_s12, 4294966272  ;;  %s1100_s27 = scalar_lea.vmem [#allocation8], %s496_s7  ;;  %p499_p6 = scmp.ne.s32.totalorder %s835_s18, 0 }
  0x6b   : > { %v243_v0 = vld [vmem:[%s201_s24] sm:$0xff] (!%p499_p6) }
  0x6c   : > { %242 = sbr.rel (%p499_p6) target bundleno = 115 (0x73), region = 44  ;;  %244 = vst [vmem:[#allocation2] sm:$0xff] (!%p499_p6), %v243_v0 }
  0x73 PF: > { %v655_v1 = vld [vmem:[%s1094_s8] sm:$0xff]   ;;  %v857_v2 = vmov 0.0   ;;  %v656_v3 = vld [vmem:[%s1094_s8 + $0x8] sm:$0xff]   ;;  %vm858_vm0 = vmmov 0   ;;  %v657_v4 = vld [vmem:[%s1094_s8 + $0x10] sm:$0xff]   ;;  %s263_s29 = scalar_lea.vmem %s1181_s2, %s835_s18  ;;  %p509_p8 = scmp.ne.s32.totalorder %s835_s18, 2 }
  0x74   : > { %524 = vmatprep.subr.bf16.mxu0 %v857_v2  ;;  %540 = vmatprep.mubr.msk.bf16.mxu0 %vm858_vm0, %v857_v2  ;;  %v658_v5 = vld [vmem:[%s1094_s8 + $0x18] sm:$0xff]   ;;  %v659_v6 = vld [vmem:[%s1094_s8 + $0x20] sm:$0xff]   ;;  %v660_v7 = vld [vmem:[%s1094_s8 + $0x28] sm:$0xff]  }
  0x75   : > { %525 = vmatpush3.bf16.msra.mxu0 %v655_v1  ;;  %v661_v8 = vld [vmem:[%s1094_s8 + $0x30] sm:$0xff]   ;;  %v662_v9 = vld [vmem:[%s1094_s8 + $0x38] sm:$0xff]   ;;  %v245_v10 = vld [vmem:[#allocation2] sm:$0xff] }
  0x76   : > { %526 = vmatprep.subr.bf16.mxu0 %v857_v2  ;;  %v246_v11 = vpack.c.bf16 %v245_v10, %v245_v10  ;;  %v500_v12 = vld [vmem:[%s263_s29] ss:$0 sm:$0xff] }
  0x79   : > { %527 = vmatpush3.bf16.msra.mxu0 %v656_v3 }
  0x7a   : > { %528 = vmatprep.subr.bf16.mxu0 %v857_v2 }
  0x7d   : > { %529 = vmatpush3.bf16.msra.mxu0 %v657_v4 }
  0x7e   : > { %530 = vmatprep.subr.bf16.mxu0 %v857_v2 }
  0x81   : > { %531 = vmatpush3.bf16.msra.mxu0 %v658_v5 }
  0x82   : > { %532 = vmatprep.subr.bf16.mxu0 %v857_v2 }
  0x85   : > { %533 = vmatpush3.bf16.msra.mxu0 %v659_v6 }
  0x86   : > { %534 = vmatprep.subr.bf16.mxu0 %v857_v2 }
  0x89   : > { %535 = vmatpush3.bf16.msra.mxu0 %v660_v7 }
  0x8a   : > { %536 = vmatprep.subr.bf16.mxu0 %v857_v2 }
  0x8d   : > { %537 = vmatpush3.bf16.msra.mxu0 %v661_v8 }
  0x8e   : > { %538 = vmatprep.subr.bf16.mxu0 %v857_v2 }
  0x91   : > { %539 = vmatpush3.bf16.msra.mxu0 %v662_v9 }
  0x94   : > { %541 = vmatmul.mubr.bf16.vlgmr.msra.gmra.mrb[0].mxu0 %v246_v11 }
 0x167   : > { %v353_v13 = vpop.f32.mrb[0].mxu0 }
 0x168   : > { %v354_v14 = vadd.f32 %v500_v12, %v353_v13  ;;  %v542_v15 = vpop.f32.mrb[1].mxu0 }
 0x169   : > { %v356_v16 = vpop.f32.mrb[2].mxu0 }
 0x16a   : > { %663 = vtanh.f32 %v354_v14  ;;  %v543_v17 = vpop.f32.mrb[3].mxu0 }
 0x16f   : > { %364 = sbr.rel (%p509_p8) target bundleno = 382 (0x17e), region = 48 }
 0x174   : > { %v664_v18 = vpop.eup %663 }
 0x175   : > { %360 = vst [vmem:[#allocation2] sm:$0xff] %v664_v18 }
 0x17c   : > { %v365_v19 = vld [vmem:[#allocation2] sm:$0xff] }
 0x17d   : > { %366 = vst [vmem:[%s1100_s27] sm:$0xff] %v365_v19 }
 0x17e PF: > { %s511_s11 = sshll.u32 %s839_s19, 7  ;;  %s381_s7 = sshll.u32 %s1100_s27, 4  ;;  %s382_s7 = int_to_ptr.vmem [resolvable:$true] %s381_s7 }
 0x17f   : > { %s1121_s6 = scalar_lea.hbm %s1182_s3, %s511_s11  ;;  %s368_s26 = scalar_lea.sflag [#allocation5], %s1085_s10 }
 0x180   : > { %s725_s24 = scalar_lea.vmem %s382_s7, 128  ;;  %p1209_p10 = scmp.ne.s32.totalorder %s1196_s4, 0 }
 0x181   : > { %p726_p13 = scmp.ne.s32.totalorder %s382_s7, %s725_s24  ;;  %s859_s18 = smov [#allocation8]  }
 0x182   : > { %s729_s0 = sshll.u32 %s859_s18, 4  ;;  %s730_s0 = int_to_ptr.vmem [resolvable:$false] %s729_s0 }
 0x183   : > { %p727_p0 = pnand %p726_p13, %p1209_p10  ;;  %s731_s9 = scalar_lea.vmem %s730_s0, 256 }
 0x184   : > { %p732_p9 = scmp.lt.s32.totalorder %s382_s7, %s730_s0  ;;  %p733_p1 = scmp.lt.s32.totalorder %s731_s9, %s725_s24 }
 0x185   : > { %p728_p7 = pneg %p727_p0 }
 0x186   : > { %p734_p4 = por %p733_p1, %p732_p9 }
 0x188   : > { %p735_p11 = pnand %p734_p4, %p728_p7 }
 0x18a   : > { %738 = shalt.err (!%p735_p11)
}
 0x18b   : > { %s739_s19 = scalar_lea.hbm %s1121_s6, 128  ;;  %s743_s8 = scalar_lea.hbm %s1182_s3, 256 }
 0x18c   : > { %p740_p3 = scmp.ne.s32.totalorder %s1121_s6, %s739_s19  ;;  %p744_p2 = scmp.lt.u32.totalorder %s1121_s6, %s1182_s3 }
 0x18d   : > { %p745_p6 = scmp.lt.u32.totalorder %s743_s8, %s739_s19  ;;  %p747_p13 = scmp.lt.u32.totalorder %s739_s19, %s1121_s6 }
 0x18e   : > { %p741_p12 = pnand %p740_p3, %p1209_p10 }
 0x18f   : > { %p746_p8 = por %p745_p6, %p744_p2 }
 0x190   : > { %p742_p5 = pneg %p741_p12 }
 0x191   : > { %p748_p0 = por %p747_p13, %p746_p8 }
 0x193   : > { %p749_p7 = pnand %p748_p0, %p742_p5 }
 0x195   : > { %752 = shalt.err (!%p749_p7)
}
 0x196   : > { %548 = dma.vmem_to_hbm [thread:$0]  (%p1209_p10), %s382_s7, 128, %s1121_s6, %s368_s26  }
 0x197 PF: > { %s1210_s30 = sld [smem:[#allocation13_spill]]  ;;  %p562_p9 = scmp.ge.s32.totalorder %s851_s22, 2 }
 0x198   : > { %s393_s29 = sand.u32 1, %s823_s15  }
 0x199   : > { %s394_s11 = scalar_lea.sflag [#allocation5], %s393_s29 }
 0x19d   : > { %p1211_p1 = scmp.ne.s32.totalorder %s1210_s30, 0 }
 0x19f   : > { %p558_p4 = pnand %p562_p9, %p1211_p1 }
 0x1a1   : > { %806 = dma.done.wait (!%p558_p4), %s394_s11, 128  }
 0x1a2   : > { %808 = vsyncadd (!%p558_p4), %s394_s11, 4294967168  ;;  %s22_s22 = sadd.s32 1, %s851_s22   ;;  %s1212_s18 = sld [smem:[#allocation12_spill]] }
 0x1a3   : > { %p19_p11 = scmp.ge.s32.totalorder %s22_s22, 8   ;;  %s1213_s4 = sld [smem:[#allocation14_spill]] }
 0x1a4   : > { %s1214_s25 = sld [smem:[#allocation15_spill]]  ;;  %s1215_s12 = smov %s815_s13 }
 0x1a5   : > { %s1216_s13 = smov %s819_s14  ;;  %s1217_s14 = smov %s1043_s5 }
 0x1a6   : > { %s1218_s15 = smov %s827_s16  ;;  %s1219_s16 = smov %s831_s17 }
 0x1a7   : > { %s1220_s17 = smov %s1052_s20  ;;  %s1221_s19 = smov %s847_s21 }
 0x1a8   :  { %21 = sbr.rel (!%p19_p11) target bundleno = 13 (0xd), region = 99 }
 0x1a9   : > { %s1222_s20 = smov %s1213_s4 }
 0x1aa   : > { %s1223_s21 = smov %s1214_s25 }
 0x1af   :  { %399 = vsyncpa [#allocation4], 1 }
 0x1b0   :  { %401 = vsyncpa [#allocation4 + $0x1], 1 }
 0x1b1   :  { %402 = vsyncpa [#allocation7], 1 }
 0x1b2   :  { %404 = vsyncpa [#allocation7 + $0x1], 1 }
 0x1b3   :  { %405 = vsyncpa [#allocation5], 1 }
 0x1b4   :  { %407 = vsyncpa [#allocation5 + $0x1], 1 }

</bundles_post_ra>
